<compile_context>
chip_gen: v5e
topology: v5e:2x2
jax: 0.10.0
libtpu: 0.0.40
codegen_flags: <defaults>
</compile_context>

<pallas_src>
import functools
import numpy as np

import jax
import jax.numpy as jnp
from jax import lax
from jax.experimental import pallas as pl
from jax.experimental.pallas import tpu as pltpu

EPS = 1e-5


# ----------------------------------------------------------------------------------------
# Host-side operand packing (numpy): interpolation matrices and banded conv weights.
# ----------------------------------------------------------------------------------------
def _bilinear_matrix(n_in, n_out):
    """(n_out, n_in) matrix implementing 1-D bilinear interp, align_corners=True."""
    a = np.zeros((n_out, n_in), np.float64)
    for i in range(n_out):
        src = 0.0 if n_out == 1 else i * (n_in - 1) / (n_out - 1)
        lo = min(int(np.floor(src)), n_in - 1)
        hi = min(lo + 1, n_in - 1)
        f = src - lo
        a[i, lo] += 1.0 - f
        a[i, hi] += f
    return a.astype(np.float32)


def _upsample_pad_matrix(n_in, n_up, n_target):
    """Upsample n_in -> n_up (bilinear, align_corners=True) then zero-embed into n_target
    with pad_tensor's split (lo = diff//2).  Returns (n_target, n_in)."""
    assert n_target >= n_up
    a = np.zeros((n_target, n_in), np.float32)
    lo = (n_target - n_up) // 2
    a[lo:lo + n_up, :] = _bilinear_matrix(n_in, n_up)
    return a


def _conv_band_matrices(w, width):
    """Banded matrices implementing the conv along x (zero-padded) for each kernel row ky.

    w: (Cout, Cin, 3, 3) PyTorch conv weight.
    Returns (3, width*Cin, width*Cout) with
      B[ky, xi*Cin + ci, xo*Cout + co] = w[co, ci, ky, xi-xo+1]   for |xi - xo| <= 1.
    """
    cout, cin = w.shape[0], w.shape[1]
    b = np.zeros((3, width * cin, width * cout), np.float32)
    for ky in range(3):
        for xo in range(width):
            for dx in (-1, 0, 1):
                xi = xo + dx
                if 0 <= xi < width:
                    b[ky, xi * cin:(xi + 1) * cin, xo * cout:(xo + 1) * cout] = \
                        w[:, :, ky, dx + 1].T
    return b


# ----------------------------------------------------------------------------------------
# Pallas kernel
# ----------------------------------------------------------------------------------------
def _lane_group_sum(v, group, ngroups):
    """Per-channel sum over the x-groups of a (x, c) lane layout, broadcast to every lane.

    v: (1, ngroups*group) f32.  Requires ngroups to be a power of two: cyclic lane rolls by
    group, 2*group, 4*group, ... cover every x offset (XLU + VPU only, no tiny matmuls).
    """
    s = v
    shift = group
    n = ngroups
    while n > 1:
        s = s + pltpu.roll(s, shift, axis=1)
        shift *= 2
        n //= 2
    return s


def _upblock_kernel(N, H, W, Cout,
                    x1_ref, x2_ref, p_ref, w1a_ref, w1b_ref, w2_ref,
                    g1_ref, be1_ref, g2_ref, be2_ref, out_ref):
    f32 = jnp.float32
    bf16 = jnp.bfloat16
    nh = out_ref.shape[0]                      # N * H
    cnt_inv = 1.0 / float(nh * W)              # 1 / (elements per channel)

    # Row-validity masks for the ky = 0 / ky = 2 conv taps, built in-kernel (no DMAs).
    yloc = lax.broadcasted_iota(jnp.int32, (nh, 1), 0)
    yloc = (yloc & (H - 1)) if (H & (H - 1)) == 0 else (yloc % H)
    mneg = (yloc > 0).astype(f32)              # row has an in-sample y-1 neighbour
    mpos = (yloc < H - 1).astype(f32)          # row has an in-sample y+1 neighbour

    # Bilinear H-upsample + pad_tensor rows: per-sample (H, H1)@(H1, W1*C1) bf16 matmul.
    # (W-upsample + x-pad is folded into w1b on the host: w1b = Q @ band(w1_x1).)
    pm = p_ref[...]
    rows = [jnp.dot(pm, x1_ref[n], preferred_element_type=f32) for n in range(N)]
    t = jnp.concatenate(rows, axis=0) if N > 1 else rows[0]          # (N*H, W1*C1) f32
    tb = t.astype(bf16)

    x2b = x2_ref[...]                                                # (N*H, W*C2) bf16

    def conv_bn_relu(parts, g_ref, b_ref):
        # parts: [(x_bf16 (nh, K_i), w_ref (3, K_i, W*Cout)), ...]   split-K, no lane concat.
        y_mid = y_up = y_dn = None
        for xb, wref in parts:
            m = jnp.dot(xb, wref[1], preferred_element_type=f32)
            u = jnp.dot(xb, wref[0], preferred_element_type=f32)
            d = jnp.dot(xb, wref[2], preferred_element_type=f32)
            y_mid = m if y_mid is None else y_mid + m
            y_up = u if y_up is None else y_up + u
            y_dn = d if y_dn is None else y_dn + d
        # ky=+/-1 taps: roll the *outputs* by one row (cyclic; nh-1 == -1 mod nh) and mask
        # the rows that have no in-sample neighbour.
        acc = (y_mid
               + pltpu.roll(y_up, 1, axis=0) * mneg
               + pltpu.roll(y_dn, nh - 1, axis=0) * mpos)
        # BatchNorm (training-mode batch stats), two-pass mean-shifted variance, all f32.
        rsum = jnp.sum(acc, axis=0, keepdims=True)                   # (1, W*Cout)
        mean_l = _lane_group_sum(rsum, Cout, W) * cnt_inv            # per-channel mean, lane-broadcast
        dlt = acc - mean_l
        rsq = jnp.sum(dlt * dlt, axis=0, keepdims=True)
        var_l = _lane_group_sum(rsq, Cout, W) * cnt_inv
        scale_l = g_ref[...] * lax.rsqrt(var_l + EPS)
        return jnp.maximum(dlt * scale_l + b_ref[...], 0.0)

    h = conv_bn_relu([(x2b, w1a_ref), (tb, w1b_ref)], g1_ref, be1_ref)
    h = conv_bn_relu([(h.astype(bf16), w2_ref)], g2_ref, be2_ref)
    out_ref[...] = h                                                 # lane-dense store


# ----------------------------------------------------------------------------------------
# Wrapper
# ----------------------------------------------------------------------------------------
def init_params(key, in_ch, out_ch):
    ks = jax.random.split(key, 8)
    return {
        "w1": jax.random.normal(ks[0], (out_ch, in_ch, 3, 3), jnp.float32) * 0.1,
        "b1": jax.random.normal(ks[1], (out_ch,), jnp.float32) * 0.1,
        "g1": 1.0 + 0.1 * jax.random.normal(ks[2], (out_ch,), jnp.float32),
        "be1": 0.1 * jax.random.normal(ks[3], (out_ch,), jnp.float32),
        "w2": jax.random.normal(ks[4], (out_ch, out_ch, 3, 3), jnp.float32) * 0.1,
        "b2": jax.random.normal(ks[5], (out_ch,), jnp.float32) * 0.1,
        "g2": 1.0 + 0.1 * jax.random.normal(ks[6], (out_ch,), jnp.float32),
        "be2": 0.1 * jax.random.normal(ks[7], (out_ch,), jnp.float32),
    }


def upblock_forward(x1_nchw, x2_nchw, params):
    """UpBlock forward (bilinear=True).  x1:(N,C1,H1,W1), x2:(N,C2,H,W) NCHW f32 -> (N,Cout,H,W)."""
    x1_nchw = jnp.asarray(x1_nchw, jnp.float32)
    x2_nchw = jnp.asarray(x2_nchw, jnp.float32)
    N, C1, H1, W1 = x1_nchw.shape
    N2, C2, H, W = x2_nchw.shape
    assert N == N2 and 2 * H1 <= H and 2 * W1 <= W
    assert W & (W - 1) == 0, "roll-tree channel reduce assumes power-of-two W"
    # TODO(synk): non power-of-two W needs a matmul fallback for the BN channel reduce.
    w1 = np.asarray(params["w1"], np.float32)
    w2 = np.asarray(params["w2"], np.float32)
    Cout = w1.shape[0]
    assert w1.shape[1] == C1 + C2

    # -------- host-side packing (precomputed once per weight set / shape in practice) -----
    ah = _upsample_pad_matrix(H1, 2 * H1, H)                      # (H, H1): H-upsample + pad rows
    aw = _upsample_pad_matrix(W1, 2 * W1, W)                      # (W, W1)
    q_mat = np.kron(aw.T, np.eye(C1, dtype=np.float32))           # (W1*C1, W*C1): W-upsample + pad
    w1a = _conv_band_matrices(w1[:, :C2], W)                      # (3, W*C2, W*Cout)  x2 K-block
    w1b = _conv_band_matrices(w1[:, C2:], W)                      # (3, W*C1, W*Cout)  x1 K-block
    w1b_q = np.einsum('kc,tcd->tkd', q_mat, w1b)                  # fold W-upsample into conv1
    w2b = _conv_band_matrices(w2, W)                              # (3, W*Cout, W*Cout)

    # BN affine params pre-broadcast to the (x, c) lane layout (tiny (1, W*Cout) operands).
    g1 = np.tile(np.asarray(params["g1"], np.float32), W).reshape(1, W * Cout)
    be1 = np.tile(np.asarray(params["be1"], np.float32), W).reshape(1, W * Cout)
    g2 = np.tile(np.asarray(params["g2"], np.float32), W).reshape(1, W * Cout)
    be2 = np.tile(np.asarray(params["be2"], np.float32), W).reshape(1, W * Cout)
    # params["b1"] / params["b2"] intentionally unused (cancelled by training-mode BN).

    # -------- lane-dense activation views, cast to bf16 (MXU-native) once at the boundary --
    x1_3 = jnp.transpose(x1_nchw, (0, 2, 3, 1)).reshape(N, H1, W1 * C1).astype(jnp.bfloat16)
    x2_2 = jnp.transpose(x2_nchw, (0, 2, 3, 1)).reshape(N * H, W * C2).astype(jnp.bfloat16)

    operands = (
        x1_3, x2_2,
        jnp.asarray(ah, jnp.bfloat16),
        jnp.asarray(w1a, jnp.bfloat16), jnp.asarray(w1b_q, jnp.bfloat16),
        jnp.asarray(w2b, jnp.bfloat16),
        jnp.asarray(g1), jnp.asarray(be1), jnp.asarray(g2), jnp.asarray(be2),
    )

    kernel = functools.partial(_upblock_kernel, N, H, W, Cout)
    out2 = pl.pallas_call(
        kernel,
        out_shape=jax.ShapeDtypeStruct((N * H, W * Cout), jnp.float32),
        grid=(1,),  # single step: BN batch statistics span the whole (N,H,W) extent here
        in_specs=[pl.BlockSpec(a.shape, lambda i, n=a.ndim: (0,) * n) for a in operands],
        out_specs=pl.BlockSpec((N * H, W * Cout), lambda i: (0, 0)),
        compiler_params=pltpu.CompilerParams(
            dimension_semantics=("arbitrary",),
            vmem_limit_bytes=64 * 1024 * 1024),
    )(*operands)

    # (N*H, W*Cout) -> NHWC is a free reshape; transpose back to NCHW for the PyTorch API.
    return jnp.transpose(out2.reshape(N, H, W, Cout), (0, 3, 1, 2))


# ----------------------------------------------------------------------------------------
# Pure-JAX reference (keeps the conv biases, which training-mode BN provably cancels)
# ----------------------------------------------------------------------------------------
def _bilinear_upsample_align_corners(x, out_h, out_w):
    n, c, h, w = x.shape

    def grid1d(n_in, n_out):
        src = (np.arange(n_out, dtype=np.float64) * (n_in - 1) / (n_out - 1)
               if n_out > 1 else np.zeros((1,), np.float64))
        lo = np.clip(np.floor(src).astype(np.int32), 0, n_in - 1)
        hi = np.minimum(lo + 1, n_in - 1)
        return lo, hi, (src - lo).astype(np.float32)

    lo_h, hi_h, fh = grid1d(h, out_h)
    lo_w, hi_w, fw = grid1d(w, out_w)
    top = x[:, :, lo_h, :] * (1.0 - fh)[None, None, :, None] + x[:, :, hi_h, :] * fh[None, None, :, None]
    return top[:, :, :, lo_w] * (1.0 - fw)[None, None, None, :] + top[:, :, :, hi_w] * fw[None, None, None, :]


def _reference(x1, x2, params):
    x1 = jnp.asarray(x1, jnp.float32)
    x2 = jnp.asarray(x2, jnp.float32)
    up = _bilinear_upsample_align_corners(x1, 2 * x1.shape[2], 2 * x1.shape[3])
    yd = x2.shape[2] - up.shape[2]
    xd = x2.shape[3] - up.shape[3]
    up = jnp.pad(up, ((0, 0), (0, 0), (yd // 2, yd - yd // 2), (xd // 2, xd - xd // 2)))
    x = jnp.concatenate([x2, up], axis=1)

    def conv_bn_relu(h, w, b, g, be):
        y = lax.conv_general_dilated(h.astype(jnp.bfloat16), jnp.asarray(w, jnp.bfloat16),
                                     (1, 1), ((1, 1), (1, 1)),
                                     dimension_numbers=("NCHW", "OIHW", "NCHW"),
                                     preferred_element_type=jnp.float32)
        y = y + b[None, :, None, None]
        m = jnp.mean(y, axis=(0, 2, 3), keepdims=True)
        v = jnp.mean((y - m) ** 2, axis=(0, 2, 3), keepdims=True)
        y = (y - m) * lax.rsqrt(v + EPS) * g[None, :, None, None] + be[None, :, None, None]
        return jnp.maximum(y, 0.0)

    h = conv_bn_relu(x, params["w1"], params["b1"], params["g1"], params["be1"])
    h = conv_bn_relu(h, params["w2"], params["b2"], params["g2"], params["be2"])
    return h


if __name__ == "__main__":
    key = jax.random.PRNGKey(0)
    k1, k2, kp = jax.random.split(key, 3)

    N, C1, C2, Cout = 2, 4, 4, 8          # UpBlock(input_size=8, output_size=8)
    H1, W1 = 7, 7                         # x1 upsamples to 14x14, pad_tensor pads to 16x16
    H, W = 16, 16
    x1 = jax.random.normal(k1, (N, C1, H1, W1), jnp.float32)
    x2 = jax.random.normal(k2, (N, C2, H, W), jnp.float32)
    params = init_params(kp, C1 + C2, Cout)

    y = jax.block_until_ready(upblock_forward(x1, x2, params))
    assert y.shape == (N, Cout, H, W), y.shape

    y_ref = _reference(x1, x2, params)
    # bf16 MXU operands for upsample + both convs (per perf guidance) -> allow small drift
    # vs the (f32-upsample, bf16-conv) reference.
    err = float(jnp.max(jnp.abs(y - y_ref)))
    assert jnp.allclose(y, y_ref, atol=3e-2, rtol=3e-2), err

    print("KERNEL_OK")
</pallas_src>

<mosaic_0001>
module attributes {stable_mosaic.version = 11 : i64} {
  func.func @_upblock_kernel(%arg0: i32, %arg1: memref<2x7x28xbf16, #tpu.memory_space<vmem>>, %arg2: memref<32x64xbf16, #tpu.memory_space<vmem>>, %arg3: memref<16x7xbf16, #tpu.memory_space<vmem>>, %arg4: memref<3x64x128xbf16, #tpu.memory_space<vmem>>, %arg5: memref<3x28x128xbf16, #tpu.memory_space<vmem>>, %arg6: memref<3x128x128xbf16, #tpu.memory_space<vmem>>, %arg7: memref<1x128xf32, #tpu.memory_space<vmem>>, %arg8: memref<1x128xf32, #tpu.memory_space<vmem>>, %arg9: memref<1x128xf32, #tpu.memory_space<vmem>>, %arg10: memref<1x128xf32, #tpu.memory_space<vmem>>, %arg11: memref<32x128xf32, #tpu.memory_space<vmem>>) attributes {dimension_semantics = [#tpu.dimension_semantics<arbitrary>], iteration_bounds = array<i64: 1>, scalar_prefetch = 0 : i64, scratch_operands = 0 : i64, tpu.core_type = #tpu.core_type<tc>, window_params = [{pipeline_mode = #tpu.pipeline_mode<synchronous>, transform_indices = @transform_0, window_bounds = array<i64: 2, 7, 28>}, {pipeline_mode = #tpu.pipeline_mode<synchronous>, transform_indices = @transform_1, window_bounds = array<i64: 32, 64>}, {pipeline_mode = #tpu.pipeline_mode<synchronous>, transform_indices = @transform_2, window_bounds = array<i64: 16, 7>}, {pipeline_mode = #tpu.pipeline_mode<synchronous>, transform_indices = @transform_3, window_bounds = array<i64: 3, 64, 128>}, {pipeline_mode = #tpu.pipeline_mode<synchronous>, transform_indices = @transform_4, window_bounds = array<i64: 3, 28, 128>}, {pipeline_mode = #tpu.pipeline_mode<synchronous>, transform_indices = @transform_5, window_bounds = array<i64: 3, 128, 128>}, {pipeline_mode = #tpu.pipeline_mode<synchronous>, transform_indices = @transform_6, window_bounds = array<i64: 1, 128>}, {pipeline_mode = #tpu.pipeline_mode<synchronous>, transform_indices = @transform_7, window_bounds = array<i64: 1, 128>}, {pipeline_mode = #tpu.pipeline_mode<synchronous>, transform_indices = @transform_8, window_bounds = array<i64: 1, 128>}, {pipeline_mode = #tpu.pipeline_mode<synchronous>, transform_indices = @transform_9, window_bounds = array<i64: 1, 128>}, {pipeline_mode = #tpu.pipeline_mode<synchronous>, transform_indices = @transform_10, window_bounds = array<i64: 32, 128>}]} {
    %0 = tpu.iota {dimensions = array<i32: 0>} : vector<32x1xi32>
    %c15_i32 = arith.constant 15 : i32
    %1 = vector.broadcast %c15_i32 : i32 to vector<32x1xi32>
    %2 = arith.andi %0, %1 : vector<32x1xi32>
    %c0_i32 = arith.constant 0 : i32
    %3 = vector.broadcast %c0_i32 : i32 to vector<32x1xi32>
    %4 = arith.cmpi sgt, %2, %3 : vector<32x1xi32>
    %5 = arith.extui %4 : vector<32x1xi1> to vector<32x1xi32>
    %6 = arith.sitofp %5 : vector<32x1xi32> to vector<32x1xf32>
    %c15_i32_0 = arith.constant 15 : i32
    %7 = vector.broadcast %c15_i32_0 : i32 to vector<32x1xi32>
    %8 = arith.cmpi slt, %2, %7 : vector<32x1xi32>
    %9 = arith.extui %8 : vector<32x1xi1> to vector<32x1xi32>
    %10 = arith.sitofp %9 : vector<32x1xi32> to vector<32x1xf32>
    %c0 = arith.constant 0 : index
    %c0_1 = arith.constant 0 : index
    %11 = vector.load %arg3[%c0, %c0_1] : memref<16x7xbf16, #tpu.memory_space<vmem>>, vector<16x7xbf16>
    %c0_2 = arith.constant 0 : index
    %c0_3 = arith.constant 0 : index
    %c0_4 = arith.constant 0 : index
    %12 = vector.load %arg1[%c0_2, %c0_3, %c0_4] : memref<2x7x28xbf16, #tpu.memory_space<vmem>>, vector<1x7x28xbf16>
    %13 = vector.shape_cast %12 : vector<1x7x28xbf16> to vector<7x28xbf16>
    %cst = arith.constant dense<0.000000e+00> : vector<16x28xf32>
    %14 = tpu.matmul %11, %13, %cst {dimension_numbers = #tpu.dot_dimension_numbers<[1], [0], [0], [1], [0, 0, 1, 1], [], []>} : vector<16x7xbf16>, vector<7x28xbf16>, vector<16x28xf32> -> vector<16x28xf32>
    %c1 = arith.constant 1 : index
    %c0_5 = arith.constant 0 : index
    %c0_6 = arith.constant 0 : index
    %15 = vector.load %arg1[%c1, %c0_5, %c0_6] : memref<2x7x28xbf16, #tpu.memory_space<vmem>>, vector<1x7x28xbf16>
    %16 = vector.shape_cast %15 : vector<1x7x28xbf16> to vector<7x28xbf16>
    %cst_7 = arith.constant dense<0.000000e+00> : vector<16x28xf32>
    %17 = tpu.matmul %11, %16, %cst_7 {dimension_numbers = #tpu.dot_dimension_numbers<[1], [0], [0], [1], [0, 0, 1, 1], [], []>} : vector<16x7xbf16>, vector<7x28xbf16>, vector<16x28xf32> -> vector<16x28xf32>
    %18 = tpu.concatenate %14, %17 in 0 : vector<16x28xf32>, vector<16x28xf32> -> vector<32x28xf32>
    %19 = arith.truncf %18 : vector<32x28xf32> to vector<32x28xbf16>
    %c0_8 = arith.constant 0 : index
    %c0_9 = arith.constant 0 : index
    %20 = vector.load %arg2[%c0_8, %c0_9] : memref<32x64xbf16, #tpu.memory_space<vmem>>, vector<32x64xbf16>
    %c1_10 = arith.constant 1 : index
    %c0_11 = arith.constant 0 : index
    %c0_12 = arith.constant 0 : index
    %21 = vector.load %arg4[%c1_10, %c0_11, %c0_12] : memref<3x64x128xbf16, #tpu.memory_space<vmem>>, vector<1x64x128xbf16>
    %22 = vector.shape_cast %21 : vector<1x64x128xbf16> to vector<64x128xbf16>
    %cst_13 = arith.constant dense<0.000000e+00> : vector<32x128xf32>
    %23 = tpu.matmul %20, %22, %cst_13 {dimension_numbers = #tpu.dot_dimension_numbers<[1], [0], [0], [1], [0, 0, 1, 1], [], []>} : vector<32x64xbf16>, vector<64x128xbf16>, vector<32x128xf32> -> vector<32x128xf32>
    %c0_14 = arith.constant 0 : index
    %c0_15 = arith.constant 0 : index
    %c0_16 = arith.constant 0 : index
    %24 = vector.load %arg4[%c0_14, %c0_15, %c0_16] : memref<3x64x128xbf16, #tpu.memory_space<vmem>>, vector<1x64x128xbf16>
    %25 = vector.shape_cast %24 : vector<1x64x128xbf16> to vector<64x128xbf16>
    %cst_17 = arith.constant dense<0.000000e+00> : vector<32x128xf32>
    %26 = tpu.matmul %20, %25, %cst_17 {dimension_numbers = #tpu.dot_dimension_numbers<[1], [0], [0], [1], [0, 0, 1, 1], [], []>} : vector<32x64xbf16>, vector<64x128xbf16>, vector<32x128xf32> -> vector<32x128xf32>
    %c2 = arith.constant 2 : index
    %c0_18 = arith.constant 0 : index
    %c0_19 = arith.constant 0 : index
    %27 = vector.load %arg4[%c2, %c0_18, %c0_19] : memref<3x64x128xbf16, #tpu.memory_space<vmem>>, vector<1x64x128xbf16>
    %28 = vector.shape_cast %27 : vector<1x64x128xbf16> to vector<64x128xbf16>
    %cst_20 = arith.constant dense<0.000000e+00> : vector<32x128xf32>
    %29 = tpu.matmul %20, %28, %cst_20 {dimension_numbers = #tpu.dot_dimension_numbers<[1], [0], [0], [1], [0, 0, 1, 1], [], []>} : vector<32x64xbf16>, vector<64x128xbf16>, vector<32x128xf32> -> vector<32x128xf32>
    %c1_21 = arith.constant 1 : index
    %c0_22 = arith.constant 0 : index
    %c0_23 = arith.constant 0 : index
    %30 = vector.load %arg5[%c1_21, %c0_22, %c0_23] : memref<3x28x128xbf16, #tpu.memory_space<vmem>>, vector<1x28x128xbf16>
    %31 = vector.shape_cast %30 : vector<1x28x128xbf16> to vector<28x128xbf16>
    %cst_24 = arith.constant dense<0.000000e+00> : vector<32x128xf32>
    %32 = tpu.matmul %19, %31, %cst_24 {dimension_numbers = #tpu.dot_dimension_numbers<[1], [0], [0], [1], [0, 0, 1, 1], [], []>} : vector<32x28xbf16>, vector<28x128xbf16>, vector<32x128xf32> -> vector<32x128xf32>
    %c0_25 = arith.constant 0 : index
    %c0_26 = arith.constant 0 : index
    %c0_27 = arith.constant 0 : index
    %33 = vector.load %arg5[%c0_25, %c0_26, %c0_27] : memref<3x28x128xbf16, #tpu.memory_space<vmem>>, vector<1x28x128xbf16>
    %34 = vector.shape_cast %33 : vector<1x28x128xbf16> to vector<28x128xbf16>
    %cst_28 = arith.constant dense<0.000000e+00> : vector<32x128xf32>
    %35 = tpu.matmul %19, %34, %cst_28 {dimension_numbers = #tpu.dot_dimension_numbers<[1], [0], [0], [1], [0, 0, 1, 1], [], []>} : vector<32x28xbf16>, vector<28x128xbf16>, vector<32x128xf32> -> vector<32x128xf32>
    %c2_29 = arith.constant 2 : index
    %c0_30 = arith.constant 0 : index
    %c0_31 = arith.constant 0 : index
    %36 = vector.load %arg5[%c2_29, %c0_30, %c0_31] : memref<3x28x128xbf16, #tpu.memory_space<vmem>>, vector<1x28x128xbf16>
    %37 = vector.shape_cast %36 : vector<1x28x128xbf16> to vector<28x128xbf16>
    %cst_32 = arith.constant dense<0.000000e+00> : vector<32x128xf32>
    %38 = tpu.matmul %19, %37, %cst_32 {dimension_numbers = #tpu.dot_dimension_numbers<[1], [0], [0], [1], [0, 0, 1, 1], [], []>} : vector<32x28xbf16>, vector<28x128xbf16>, vector<32x128xf32> -> vector<32x128xf32>
    %39 = arith.addf %23, %32 : vector<32x128xf32>
    %40 = arith.addf %26, %35 : vector<32x128xf32>
    %41 = arith.addf %29, %38 : vector<32x128xf32>
    %c1_i32 = arith.constant 1 : i32
    %42 = tpu.dynamic_rotate %40 by %c1_i32 dim 0 : vector<32x128xf32>, i32 -> vector<32x128xf32>
    %43 = vector.broadcast %6 : vector<32x1xf32> to vector<32x128xf32>
    %44 = arith.mulf %42, %43 : vector<32x128xf32>
    %45 = arith.addf %39, %44 : vector<32x128xf32>
    %c31_i32 = arith.constant 31 : i32
    %46 = tpu.dynamic_rotate %41 by %c31_i32 dim 0 : vector<32x128xf32>, i32 -> vector<32x128xf32>
    %47 = vector.broadcast %10 : vector<32x1xf32> to vector<32x128xf32>
    %48 = arith.mulf %46, %47 : vector<32x128xf32>
    %49 = arith.addf %45, %48 : vector<32x128xf32>
    %cst_33 = arith.constant dense<0.000000e+00> : vector<128xf32>
    %50 = vector.multi_reduction <add>, %49, %cst_33 [0] : vector<32x128xf32> to vector<128xf32>
    %51 = vector.shape_cast %50 : vector<128xf32> to vector<1x128xf32>
    %c8_i32 = arith.constant 8 : i32
    %52 = tpu.dynamic_rotate %51 by %c8_i32 dim 1 : vector<1x128xf32>, i32 -> vector<1x128xf32>
    %53 = arith.addf %51, %52 : vector<1x128xf32>
    %c16_i32 = arith.constant 16 : i32
    %54 = tpu.dynamic_rotate %53 by %c16_i32 dim 1 : vector<1x128xf32>, i32 -> vector<1x128xf32>
    %55 = arith.addf %53, %54 : vector<1x128xf32>
    %c32_i32 = arith.constant 32 : i32
    %56 = tpu.dynamic_rotate %55 by %c32_i32 dim 1 : vector<1x128xf32>, i32 -> vector<1x128xf32>
    %57 = arith.addf %55, %56 : vector<1x128xf32>
    %c64_i32 = arith.constant 64 : i32
    %58 = tpu.dynamic_rotate %57 by %c64_i32 dim 1 : vector<1x128xf32>, i32 -> vector<1x128xf32>
    %59 = arith.addf %57, %58 : vector<1x128xf32>
    %cst_34 = arith.constant 0.001953125 : f32
    %60 = vector.broadcast %cst_34 : f32 to vector<1x128xf32>
    %61 = arith.mulf %59, %60 : vector<1x128xf32>
    %62 = vector.broadcast %61 : vector<1x128xf32> to vector<32x128xf32>
    %63 = arith.subf %49, %62 : vector<32x128xf32>
    %64 = arith.mulf %63, %63 : vector<32x128xf32>
    %cst_35 = arith.constant dense<0.000000e+00> : vector<128xf32>
    %65 = vector.multi_reduction <add>, %64, %cst_35 [0] : vector<32x128xf32> to vector<128xf32>
    %66 = vector.shape_cast %65 : vector<128xf32> to vector<1x128xf32>
    %c8_i32_36 = arith.constant 8 : i32
    %67 = tpu.dynamic_rotate %66 by %c8_i32_36 dim 1 : vector<1x128xf32>, i32 -> vector<1x128xf32>
    %68 = arith.addf %66, %67 : vector<1x128xf32>
    %c16_i32_37 = arith.constant 16 : i32
    %69 = tpu.dynamic_rotate %68 by %c16_i32_37 dim 1 : vector<1x128xf32>, i32 -> vector<1x128xf32>
    %70 = arith.addf %68, %69 : vector<1x128xf32>
    %c32_i32_38 = arith.constant 32 : i32
    %71 = tpu.dynamic_rotate %70 by %c32_i32_38 dim 1 : vector<1x128xf32>, i32 -> vector<1x128xf32>
    %72 = arith.addf %70, %71 : vector<1x128xf32>
    %c64_i32_39 = arith.constant 64 : i32
    %73 = tpu.dynamic_rotate %72 by %c64_i32_39 dim 1 : vector<1x128xf32>, i32 -> vector<1x128xf32>
    %74 = arith.addf %72, %73 : vector<1x128xf32>
    %cst_40 = arith.constant 0.001953125 : f32
    %75 = vector.broadcast %cst_40 : f32 to vector<1x128xf32>
    %76 = arith.mulf %74, %75 : vector<1x128xf32>
    %c0_41 = arith.constant 0 : index
    %c0_42 = arith.constant 0 : index
    %77 = vector.load %arg7[%c0_41, %c0_42] : memref<1x128xf32, #tpu.memory_space<vmem>>, vector<1x128xf32>
    %cst_43 = arith.constant 9.99999974E-6 : f32
    %78 = vector.broadcast %cst_43 : f32 to vector<1x128xf32>
    %79 = arith.addf %76, %78 : vector<1x128xf32>
    %80 = math.rsqrt %79 : vector<1x128xf32>
    %81 = arith.mulf %77, %80 : vector<1x128xf32>
    %82 = vector.broadcast %81 : vector<1x128xf32> to vector<32x128xf32>
    %83 = arith.mulf %63, %82 : vector<32x128xf32>
    %c0_44 = arith.constant 0 : index
    %c0_45 = arith.constant 0 : index
    %84 = vector.load %arg8[%c0_44, %c0_45] : memref<1x128xf32, #tpu.memory_space<vmem>>, vector<1x128xf32>
    %85 = vector.broadcast %84 : vector<1x128xf32> to vector<32x128xf32>
    %86 = arith.addf %83, %85 : vector<32x128xf32>
    %cst_46 = arith.constant 0.000000e+00 : f32
    %87 = vector.broadcast %cst_46 : f32 to vector<32x128xf32>
    %88 = arith.maximumf %86, %87 : vector<32x128xf32>
    %89 = arith.truncf %88 : vector<32x128xf32> to vector<32x128xbf16>
    %c1_47 = arith.constant 1 : index
    %c0_48 = arith.constant 0 : index
    %c0_49 = arith.constant 0 : index
    %90 = vector.load %arg6[%c1_47, %c0_48, %c0_49] : memref<3x128x128xbf16, #tpu.memory_space<vmem>>, vector<1x128x128xbf16>
    %91 = vector.shape_cast %90 : vector<1x128x128xbf16> to vector<128x128xbf16>
    %cst_50 = arith.constant dense<0.000000e+00> : vector<32x128xf32>
    %92 = tpu.matmul %89, %91, %cst_50 {dimension_numbers = #tpu.dot_dimension_numbers<[1], [0], [0], [1], [0, 0, 1, 1], [], []>} : vector<32x128xbf16>, vector<128x128xbf16>, vector<32x128xf32> -> vector<32x128xf32>
    %c0_51 = arith.constant 0 : index
    %c0_52 = arith.constant 0 : index
    %c0_53 = arith.constant 0 : index
    %93 = vector.load %arg6[%c0_51, %c0_52, %c0_53] : memref<3x128x128xbf16, #tpu.memory_space<vmem>>, vector<1x128x128xbf16>
    %94 = vector.shape_cast %93 : vector<1x128x128xbf16> to vector<128x128xbf16>
    %cst_54 = arith.constant dense<0.000000e+00> : vector<32x128xf32>
    %95 = tpu.matmul %89, %94, %cst_54 {dimension_numbers = #tpu.dot_dimension_numbers<[1], [0], [0], [1], [0, 0, 1, 1], [], []>} : vector<32x128xbf16>, vector<128x128xbf16>, vector<32x128xf32> -> vector<32x128xf32>
    %c2_55 = arith.constant 2 : index
    %c0_56 = arith.constant 0 : index
    %c0_57 = arith.constant 0 : index
    %96 = vector.load %arg6[%c2_55, %c0_56, %c0_57] : memref<3x128x128xbf16, #tpu.memory_space<vmem>>, vector<1x128x128xbf16>
    %97 = vector.shape_cast %96 : vector<1x128x128xbf16> to vector<128x128xbf16>
    %cst_58 = arith.constant dense<0.000000e+00> : vector<32x128xf32>
    %98 = tpu.matmul %89, %97, %cst_58 {dimension_numbers = #tpu.dot_dimension_numbers<[1], [0], [0], [1], [0, 0, 1, 1], [], []>} : vector<32x128xbf16>, vector<128x128xbf16>, vector<32x128xf32> -> vector<32x128xf32>
    %c1_i32_59 = arith.constant 1 : i32
    %99 = tpu.dynamic_rotate %95 by %c1_i32_59 dim 0 : vector<32x128xf32>, i32 -> vector<32x128xf32>
    %100 = vector.broadcast %6 : vector<32x1xf32> to vector<32x128xf32>
    %101 = arith.mulf %99, %100 : vector<32x128xf32>
    %102 = arith.addf %92, %101 : vector<32x128xf32>
    %c31_i32_60 = arith.constant 31 : i32
    %103 = tpu.dynamic_rotate %98 by %c31_i32_60 dim 0 : vector<32x128xf32>, i32 -> vector<32x128xf32>
    %104 = vector.broadcast %10 : vector<32x1xf32> to vector<32x128xf32>
    %105 = arith.mulf %103, %104 : vector<32x128xf32>
    %106 = arith.addf %102, %105 : vector<32x128xf32>
    %cst_61 = arith.constant dense<0.000000e+00> : vector<128xf32>
    %107 = vector.multi_reduction <add>, %106, %cst_61 [0] : vector<32x128xf32> to vector<128xf32>
    %108 = vector.shape_cast %107 : vector<128xf32> to vector<1x128xf32>
    %c8_i32_62 = arith.constant 8 : i32
    %109 = tpu.dynamic_rotate %108 by %c8_i32_62 dim 1 : vector<1x128xf32>, i32 -> vector<1x128xf32>
    %110 = arith.addf %108, %109 : vector<1x128xf32>
    %c16_i32_63 = arith.constant 16 : i32
    %111 = tpu.dynamic_rotate %110 by %c16_i32_63 dim 1 : vector<1x128xf32>, i32 -> vector<1x128xf32>
    %112 = arith.addf %110, %111 : vector<1x128xf32>
    %c32_i32_64 = arith.constant 32 : i32
    %113 = tpu.dynamic_rotate %112 by %c32_i32_64 dim 1 : vector<1x128xf32>, i32 -> vector<1x128xf32>
    %114 = arith.addf %112, %113 : vector<1x128xf32>
    %c64_i32_65 = arith.constant 64 : i32
    %115 = tpu.dynamic_rotate %114 by %c64_i32_65 dim 1 : vector<1x128xf32>, i32 -> vector<1x128xf32>
    %116 = arith.addf %114, %115 : vector<1x128xf32>
    %cst_66 = arith.constant 0.001953125 : f32
    %117 = vector.broadcast %cst_66 : f32 to vector<1x128xf32>
    %118 = arith.mulf %116, %117 : vector<1x128xf32>
    %119 = vector.broadcast %118 : vector<1x128xf32> to vector<32x128xf32>
    %120 = arith.subf %106, %119 : vector<32x128xf32>
    %121 = arith.mulf %120, %120 : vector<32x128xf32>
    %cst_67 = arith.constant dense<0.000000e+00> : vector<128xf32>
    %122 = vector.multi_reduction <add>, %121, %cst_67 [0] : vector<32x128xf32> to vector<128xf32>
    %123 = vector.shape_cast %122 : vector<128xf32> to vector<1x128xf32>
    %c8_i32_68 = arith.constant 8 : i32
    %124 = tpu.dynamic_rotate %123 by %c8_i32_68 dim 1 : vector<1x128xf32>, i32 -> vector<1x128xf32>
    %125 = arith.addf %123, %124 : vector<1x128xf32>
    %c16_i32_69 = arith.constant 16 : i32
    %126 = tpu.dynamic_rotate %125 by %c16_i32_69 dim 1 : vector<1x128xf32>, i32 -> vector<1x128xf32>
    %127 = arith.addf %125, %126 : vector<1x128xf32>
    %c32_i32_70 = arith.constant 32 : i32
    %128 = tpu.dynamic_rotate %127 by %c32_i32_70 dim 1 : vector<1x128xf32>, i32 -> vector<1x128xf32>
    %129 = arith.addf %127, %128 : vector<1x128xf32>
    %c64_i32_71 = arith.constant 64 : i32
    %130 = tpu.dynamic_rotate %129 by %c64_i32_71 dim 1 : vector<1x128xf32>, i32 -> vector<1x128xf32>
    %131 = arith.addf %129, %130 : vector<1x128xf32>
    %cst_72 = arith.constant 0.001953125 : f32
    %132 = vector.broadcast %cst_72 : f32 to vector<1x128xf32>
    %133 = arith.mulf %131, %132 : vector<1x128xf32>
    %c0_73 = arith.constant 0 : index
    %c0_74 = arith.constant 0 : index
    %134 = vector.load %arg9[%c0_73, %c0_74] : memref<1x128xf32, #tpu.memory_space<vmem>>, vector<1x128xf32>
    %cst_75 = arith.constant 9.99999974E-6 : f32
    %135 = vector.broadcast %cst_75 : f32 to vector<1x128xf32>
    %136 = arith.addf %133, %135 : vector<1x128xf32>
    %137 = math.rsqrt %136 : vector<1x128xf32>
    %138 = arith.mulf %134, %137 : vector<1x128xf32>
    %139 = vector.broadcast %138 : vector<1x128xf32> to vector<32x128xf32>
    %140 = arith.mulf %120, %139 : vector<32x128xf32>
    %c0_76 = arith.constant 0 : index
    %c0_77 = arith.constant 0 : index
    %141 = vector.load %arg10[%c0_76, %c0_77] : memref<1x128xf32, #tpu.memory_space<vmem>>, vector<1x128xf32>
    %142 = vector.broadcast %141 : vector<1x128xf32> to vector<32x128xf32>
    %143 = arith.addf %140, %142 : vector<32x128xf32>
    %cst_78 = arith.constant 0.000000e+00 : f32
    %144 = vector.broadcast %cst_78 : f32 to vector<32x128xf32>
    %145 = arith.maximumf %143, %144 : vector<32x128xf32>
    %c0_79 = arith.constant 0 : index
    %c0_80 = arith.constant 0 : index
    %146 = vector.load %arg11[%c0_79, %c0_80] : memref<32x128xf32, #tpu.memory_space<vmem>>, vector<32x128xf32>
    tpu.vector_store %arg11[%c0_79, %c0_80], %145 {strides = array<i32>} : memref<32x128xf32, #tpu.memory_space<vmem>>, vector<32x128xf32>,
    return
  }
  func.func @transform_0(%arg0: i32) -> (i32, i32, i32) {
    %c0_i32 = arith.constant 0 : i32
    %c0_i32_0 = arith.constant 0 : i32
    %c0_i32_1 = arith.constant 0 : i32
    %c0_i32_2 = arith.constant 0 : i32
    return %c0_i32, %c0_i32_0, %c0_i32_1 : i32, i32, i32
  }
  func.func @transform_1(%arg0: i32) -> (i32, i32) {
    %c0_i32 = arith.constant 0 : i32
    %c0_i32_0 = arith.constant 0 : i32
    %c0_i32_1 = arith.constant 0 : i32
    return %c0_i32, %c0_i32_0 : i32, i32
  }
  func.func @transform_2(%arg0: i32) -> (i32, i32) {
    %c0_i32 = arith.constant 0 : i32
    %c0_i32_0 = arith.constant 0 : i32
    %c0_i32_1 = arith.constant 0 : i32
    return %c0_i32, %c0_i32_0 : i32, i32
  }
  func.func @transform_3(%arg0: i32) -> (i32, i32, i32) {
    %c0_i32 = arith.constant 0 : i32
    %c0_i32_0 = arith.constant 0 : i32
    %c0_i32_1 = arith.constant 0 : i32
    %c0_i32_2 = arith.constant 0 : i32
    return %c0_i32, %c0_i32_0, %c0_i32_1 : i32, i32, i32
  }
  func.func @transform_4(%arg0: i32) -> (i32, i32, i32) {
    %c0_i32 = arith.constant 0 : i32
    %c0_i32_0 = arith.constant 0 : i32
    %c0_i32_1 = arith.constant 0 : i32
    %c0_i32_2 = arith.constant 0 : i32
    return %c0_i32, %c0_i32_0, %c0_i32_1 : i32, i32, i32
  }
  func.func @transform_5(%arg0: i32) -> (i32, i32, i32) {
    %c0_i32 = arith.constant 0 : i32
    %c0_i32_0 = arith.constant 0 : i32
    %c0_i32_1 = arith.constant 0 : i32
    %c0_i32_2 = arith.constant 0 : i32
    return %c0_i32, %c0_i32_0, %c0_i32_1 : i32, i32, i32
  }
  func.func @transform_6(%arg0: i32) -> (i32, i32) {
    %c0_i32 = arith.constant 0 : i32
    %c0_i32_0 = arith.constant 0 : i32
    %c0_i32_1 = arith.constant 0 : i32
    return %c0_i32, %c0_i32_0 : i32, i32
  }
  func.func @transform_7(%arg0: i32) -> (i32, i32) {
    %c0_i32 = arith.constant 0 : i32
    %c0_i32_0 = arith.constant 0 : i32
    %c0_i32_1 = arith.constant 0 : i32
    return %c0_i32, %c0_i32_0 : i32, i32
  }
  func.func @transform_8(%arg0: i32) -> (i32, i32) {
    %c0_i32 = arith.constant 0 : i32
    %c0_i32_0 = arith.constant 0 : i32
    %c0_i32_1 = arith.constant 0 : i32
    return %c0_i32, %c0_i32_0 : i32, i32
  }
  func.func @transform_9(%arg0: i32) -> (i32, i32) {
    %c0_i32 = arith.constant 0 : i32
    %c0_i32_0 = arith.constant 0 : i32
    %c0_i32_1 = arith.constant 0 : i32
    return %c0_i32, %c0_i32_0 : i32, i32
  }
  func.func @transform_10(%arg0: i32) -> (i32, i32) {
    %c0_i32 = arith.constant 0 : i32
    %c0_i32_0 = arith.constant 0 : i32
    %c0_i32_1 = arith.constant 0 : i32
    return %c0_i32, %c0_i32_0 : i32, i32
  }
}

</mosaic_0001>

<bundles_post_ra>
// kernel: tpu_custom_call.1
= control target key start
LH: loop header
LB: loop body
LE: loop exit
PB: predicated region body
PF: predicated region fallthrough
CT: control target
= control target key end

     0   :  { %15 = vsyncpa [#allocation3], 0  ;;  %s1569_s0 = inlined_call_operand.vmem [shape: bf16[2,7,28], index: 0, kind: input, shape index: {}]   ;;  %s1570_s1 = inlined_call_operand.vmem [shape: bf16[32,64], index: 1, kind: input, shape index: {}]   ;;  %s1571_s2 = inlined_call_operand.vmem [shape: bf16[16,7], index: 2, kind: input, shape index: {}]   ;;  %s1572_s3 = inlined_call_operand.hbm [shape: bf16[3,64,128], index: 3, kind: input, shape index: {}]   ;;  %s1573_s4 = inlined_call_operand.hbm [shape: bf16[3,28,128], index: 4, kind: input, shape index: {}]   ;;  %s1574_s5 = inlined_call_operand.hbm [shape: bf16[3,128,128], index: 5, kind: input, shape index: {}]   ;;  %s1575_s6 = inlined_call_operand.vmem [shape: f32[1,128], index: 6, kind: input, shape index: {}]   ;;  %s1576_s7 = inlined_call_operand.vmem [shape: f32[1,128], index: 7, kind: input, shape index: {}]   ;;  %s1577_s8 = inlined_call_operand.vmem [shape: f32[1,128], index: 8, kind: input, shape index: {}]   ;;  %s1578_s9 = inlined_call_operand.vmem [shape: f32[1,128], index: 9, kind: input, shape index: {}]   ;;  %s1579_s10 = inlined_call_operand.hbm [shape: f32[32,128], index: 10, kind: output, shape index: {}]  }
   0x1   :  { %16 = vsyncpa [#allocation6], 0 }
   0x2   :  { %17 = vsyncpa [#allocation4], 0  ;;  %s41_s15 = sshll.u32 %s1573_s4, 4  ;;  %s1343_s16 = smov [#allocation5]   ;;  %s42_s15 = int_to_ptr.hbm [resolvable:$true] %s41_s15 }
   0x3   :  { %s43_s17 = sshll.u32 %s1343_s16, 4  ;;  %s28_s20 = sshll.u32 %s1572_s3, 4  ;;  %s44_s17 = int_to_ptr.vmem [resolvable:$true] %s43_s17  ;;  %s29_s20 = int_to_ptr.hbm [resolvable:$true] %s28_s20 }
   0x4   :  { %s1344_s21 = smov 64   ;;  %s1345_s22 = smov 4  }
   0x5   :  { %49 = dma.hbm_to_vmem [thread:$0]  %s42_s15, 768, %s44_s17, [#allocation6], %s1344_s21, %s1344_s21, %s1345_s22  }
   0x6   :  { %s1346_s23 = smov [#allocation2]   ;;  %s54_s4 = sshll.u32 %s1574_s5, 4  ;;  %s55_s4 = int_to_ptr.hbm [resolvable:$true] %s54_s4 }
   0x7   :  { %s30_s24 = sshll.u32 %s1346_s23, 4  ;;  %s1347_s27 = smov [#allocation7]   ;;  %s31_s24 = int_to_ptr.vmem [resolvable:$true] %s30_s24 }
   0x8   :  { %36 = dma.hbm_to_vmem [thread:$0]  %s29_s20, 1536, %s31_s24, [#allocation3], %s1344_s21, %s1344_s21, %s1345_s22  }
   0x9   :  { %s56_s28 = sshll.u32 %s1347_s27, 4  ;;  %s57_s28 = int_to_ptr.vmem [resolvable:$true] %s56_s28 }
   0xa   :  { %62 = dma.hbm_to_vmem [thread:$0]  %s55_s4, 3072, %s57_s28, [#allocation6], %s1344_s21, %s1344_s21, %s1345_s22  }
   0xb   :  { %1337 = dma.done.wait [#allocation3], 1536  }
   0xc   :  { %1338 = vsyncadd [#allocation3], 4294965760 }
   0xd   :  { %1339 = dma.done.wait [#allocation6], 3840  }
   0xe   :  { %1340 = vsyncadd [#allocation6], 4294963456  ;;  %vm129_vm0 = vcmask 1042432   ;;  %vm130_vm1 = vcmask 1043456   ;;  %v1348_v0 = vmov 65535   ;;  %v1182_v7 = vld [vmem:[#allocation2 + $0x38] sm:$0xff]  ;;  %v84_v57 = vlaneseq }
   0xf   :  { %v131_v1 = vsel %vm129_vm0, 4294967295, %v1348_v0  ;;  %v119_v3 = vld [vmem:[%s1569_s0] sm:$0xf]  ;;  %v986_v4 = vld [vmem:[%s1569_s0 + $0x4] sm:$0xf]  ;;  %vm125_vm2 = vcmask 56320  }
  0x10   :  { %v132_v2 = vsel %vm130_vm1, %v131_v1, 0  ;;  %v1176_v8 = vld [vmem:[%s1571_s2] sm:$0xff]  ;;  %v1181_v9 = vld [vmem:[#allocation2 + $0x30] sm:$0xff]  ;;  %v1180_v10 = vld [vmem:[#allocation2 + $0x28] sm:$0xff]  ;;  %vm356_vm3 = vcmask 523264   ;;  %vm224_vm4 = vcmask 1045504  }
  0x11   :  { %v134_v5 = vand.u32 %v132_v2, %v119_v3  ;;  %v153_v6 = vand.u32 %v986_v4, %v132_v2  ;;  %v1179_v11 = vld [vmem:[#allocation2 + $0x20] sm:$0xff]  ;;  %v994_v13 = vld [vmem:[#allocation5 + $0x18] sm:$0xf]  ;;  %v1192_v14 = vld [vmem:[#allocation5 + $0x18] sm:$0x30]  ;;  %vm217_vm5 = vcmask 228352  }
  0x12   :  { %v1177_v12 = vld [vmem:[%s1570_s1] sm:$0xff]  ;;  %v995_v15 = vor.u32 %v1192_v14, %v994_v13  ;;  %v1014_v16 = vld [vmem:[#allocation5 + $0x28] sm:$0xf]  ;;  %v1196_v17 = vld [vmem:[#allocation5 + $0x28] sm:$0x30]  ;;  %v1459_v60 = vshrl.u32 %v84_v57, 7 }
  0x13   :  { %143 = vmatpush.bf16.msra.mxu0 %v134_v5  ;;  %162 = vmatpush.bf16.msra.mxu1 %v153_v6  ;;  %v1015_v18 = vor.u32 %v1196_v17, %v1014_v16  ;;  %v1191_v21 = vld [vmem:[#allocation5 + $0x10] sm:$0xff]  ;;  %v1195_v22 = vld [vmem:[#allocation5 + $0x20] sm:$0xff]  ;;  %v1004_v23 = vld [vmem:[#allocation5 + $0x8] sm:$0xf]  ;;  %s1351_s15 = smov 16   ;;  %s1352_s16 = smov 32  }
  0x14   :  { %v226_v19 = vsel %vm224_vm4, %v995_v15, 0  ;;  %v1194_v24 = vld [vmem:[#allocation5 + $0x8] sm:$0x30]  ;;  %v1186_v25 = vld [vmem:[#allocation2 + $0x18] sm:$0xff]  ;;  %v1185_v27 = vld [vmem:[#allocation2 + $0x10] sm:$0xff]  ;;  %v86_v61 = vadd.s32 8, %v1459_v60 }
  0x15   :  { %234 = vmatpush.bf16.msra.mxu2 %v226_v19  ;;  %1221 = vmatpush.bf16.msra.mxu3 %v226_v19  ;;  %v301_v20 = vsel %vm224_vm4, %v1015_v18, 0  ;;  %v1005_v26 = vor.u32 %v1194_v24, %v1004_v23  ;;  %v1178_v28 = vld [vmem:[%s1570_s1 + $0x8] sm:$0xff]  ;;  %v1193_v30 = vld [vmem:[#allocation5] sm:$0xff]  ;;  %v1190_v37 = vld [vmem:[#allocation2 + $0x58] sm:$0xff]  ;;  %v87_v0 = vadd.s32 16, %v1459_v60  ;;  %v89_v1 = vand.u32 15, %v1459_v60 }
  0x16   :  { %985 = vmatmul.msk.bf16.vlgmr.msra.gmra.mxu0 %vm125_vm2, %v1176_v8  ;;  %987 = vmatmul.msk.bf16.vlgmr.msra.gmra.mxu1 %vm125_vm2, %v1176_v8  ;;  %v1184_v31 = vld [vmem:[#allocation2 + $0x8] sm:$0xff]  ;;  %v1183_v32 = vld [vmem:[#allocation2] sm:$0xff]  ;;  %v1189_v40 = vld [vmem:[#allocation2 + $0x50] sm:$0xff]  ;;  %v90_v3 = vand.u32 15, %v86_v61  ;;  %v88_v13 = vadd.s32 24, %v1459_v60  ;;  %vm472_vm8 = vcmp.lt.s32.totalorder %v1459_v60, 1 }
  0x17   :  { %367 = vmatpush.bf16.msrb.mxu1 %v1182_v7  ;;  %309 = vmatpush.bf16.msrb.mxu0 %v301_v20  ;;  %v263_v29 = vsel %vm224_vm4, %v1005_v26, 0  ;;  %v1188_v41 = vld [vmem:[#allocation2 + $0x48] sm:$0xff]  ;;  %v1187_v42 = vld [vmem:[#allocation2 + $0x40] sm:$0xff]  ;;  %v91_v8 = vand.u32 15, %v87_v0  ;;  %vm93_vm6 = vcmp.gt.s32.totalorder %v89_v1, 0  ;;  %v1349_v18 = vmov 0.0  }
  0x18   :  { %vm106_vm7 = vcmp.lt.s32.totalorder %v90_v3, 15  ;;  %v1466_v19 = vsel %vm93_vm6, 1.0, %v1349_v18  ;;  %vm489_vm10 = vcmp.lt.s32.totalorder %v1459_v60, 7  ;;  %s1350_s1 = smov 8   ;;  %s1353_s23 = smov [#allocation8]  }
  0x19   :  { %235 = vmatpush.bf16.msra.mxu2 %v1191_v21  ;;  %1222 = vmatpush.bf16.msra.mxu3 %v1191_v21  ;;  %vm95_vm9 = vcmp.gt.s32.totalorder %v91_v8, 0  ;;  %v1468_v20 = vsel %vm106_vm7, 1.0, %v1349_v18  ;;  %s963_s26 = sshll.u32 %s1579_s10, 4  ;;  %s964_s26 = int_to_ptr.hbm [resolvable:$true] %s963_s26 }
  0x1b   :  { %368 = vmatpush.bf16.msrb.mxu1 %v1181_v9  ;;  %310 = vmatpush.bf16.msrb.mxu0 %v1195_v22 }
  0x1d   :  { %410 = vmatpush.bf16.msrb.mxu2 %v1186_v25  ;;  %271 = vmatpush.bf16.msrb.mxu3 %v263_v29  ;;  %v92_v25 = vand.u32 15, %v88_v13 }
  0x1f   :  { %369 = vmatpush.bf16.msrb.mxu1 %v1180_v10  ;;  %vm108_vm11 = vcmp.lt.s32.totalorder %v92_v25, 15 }
  0x21   :  { %411 = vmatpush.bf16.msrb.mxu2 %v1185_v27  ;;  %272 = vmatpush.bf16.msrb.mxu3 %v1193_v30  ;;  %v1475_v27 = vsel %vm95_vm9, 1.0, %v1349_v18 }
  0x23   :  { %370 = vmatpush.bf16.msrb.mxu1 %v1179_v11 }
  0x25   :  { %412 = vmatpush.bf16.msrb.mxu2 %v1184_v31 }
  0x26   :  { %1042 = vmatmul.msk.bf16.vlgmr.msrb.gmra.mxu1 %vm356_vm3, %v1177_v12 }
  0x29   :  { %413 = vmatpush.bf16.msrb.mxu2 %v1183_v32 }
  0x36   :  { %1043 = vmatmul.msk.bf16.gmra.mxu1 %vm356_vm3, %v1178_v28 }
  0x93   :  { %v145_v33 = vpop.f32.mrf.mxu0  ;;  %v164_v34 = vpop.f32.mrf.mxu1 }
  0x9b   :  { %v147_v35 = vpop.f32.mrf.mxu0  ;;  %v166_v36 = vpop.f32.mrf.mxu1 }
  0x9c   :  { %v169_v38 = vpack.c.bf16 %v147_v35, %v145_v33  ;;  %v170_v39 = vpack.c.bf16 %v166_v36, %v164_v34 }
  0x9e   :  { %996 = vmatmul.msk.bf16.vlgmr.msra.gmra.mxu2 %vm217_vm5, %v169_v38  ;;  %997 = vmatmul.msk.bf16.vlgmr.msra.gmra.mxu3 %vm217_vm5, %v170_v39 }
  0x9f   :  { %1016 = vmatmul.msk.bf16.vlgmr.msrb.gmra.mxu0 %vm217_vm5, %v169_v38  ;;  %453 = vmatpush.bf16.msra.mxu3 %v1190_v37 }
  0xa3   :  { %454 = vmatpush.bf16.msra.mxu3 %v1189_v40  ;;  %v372_v54 = vpop.f32.mrf.mxu1 }
  0xa7   :  { %455 = vmatpush.bf16.msra.mxu3 %v1188_v41 }
  0xab   :  { %456 = vmatpush.bf16.msra.mxu3 %v1187_v42  ;;  %v374_v59 = vpop.f32.mrf.mxu1 }
  0xae   :  { %1006 = vmatmul.msk.bf16.vlgmr.msrb.gmra.mxu3 %vm217_vm5, %v169_v38  ;;  %1060 = vmatmul.msk.bf16.vlgmr.msrb.gmra.mxu2 %vm356_vm3, %v1177_v12 }
  0xaf   :  { %1017 = vmatmul.msk.bf16.gmra.mxu0 %vm217_vm5, %v170_v39 }
  0xb3   :  { %v377_v9 = vpop.f32.mrf.mxu1 }
  0xbe   :  { %1007 = vmatmul.msk.bf16.gmra.mxu3 %vm217_vm5, %v170_v39  ;;  %1061 = vmatmul.msk.bf16.gmra.mxu2 %vm356_vm3, %v1178_v28  ;;  %v379_v39 = vpop.f32.mrf.mxu1 }
  0xce   :  { %1078 = vmatmul.msk.bf16.vlgmr.msra.gmra.mxu3 %vm356_vm3, %v1177_v12 }
  0xde   :  { %1079 = vmatmul.msk.bf16.gmra.mxu3 %vm356_vm3, %v1178_v28 }
 0x11c   :  { %v312_v53 = vpop.f32.mrf.mxu0 }
 0x121   :  { %v1455_v43 = vpop.f32.mrf.mxu3  ;;  %v237_v44 = vpop.f32.mrf.mxu2 }
 0x122   :  { %v373_v34 = vadd.f32 %v372_v54, %v237_v44  ;;  %v378_v42 = vadd.f32 %v377_v9, %v1455_v43 }
 0x124   :  { %v314_v58 = vpop.f32.mrf.mxu0 }
 0x129   :  { %v1457_v45 = vpop.f32.mrf.mxu3  ;;  %v239_v46 = vpop.f32.mrf.mxu2 }
 0x12a   :  { %v375_v30 = vadd.f32 %v374_v59, %v239_v46 }
 0x12c   :  { %v317_v7 = vpop.f32.mrf.mxu0 }
 0x131   :  { %v274_v47 = vpop.f32.mrf.mxu3  ;;  %v415_v49 = vpop.f32.mrf.mxu2 }
 0x132   :  { %v416_v4 = vadd.f32 %v415_v49, %v274_v47  ;;  %v1489_v49 = vsel %vm108_vm11, 1.0, %v1349_v18 }
 0x134   :  { %v468_v14 = vrot.slane %v416_v4, 7  ;;  %v319_v35 = vpop.f32.mrf.mxu0 }
 0x139   :  { %v276_v48 = vpop.f32.mrf.mxu3  ;;  %v417_v51 = vpop.f32.mrf.mxu2 }
 0x13a   :  { %v418_v5 = vadd.f32 %v417_v51, %v276_v48 }
 0x13c   :  { %v469_v15 = vrot.slane %v418_v5, 7 }
 0x13e   :  { %v475_v26 = vsel %vm472_vm8, %v468_v14, %v469_v15 }
 0x13f   :  { %v482_v36 = vadd.f32 %v475_v26, %v375_v30 }
 0x141   :  { %v279_v50 = vpop.f32.mrf.mxu3  ;;  %v420_v55 = vpop.f32.mrf.mxu2 }
 0x142   :  { %v421_v6 = vadd.f32 %v420_v55, %v279_v50  ;;  %v380_v50 = vadd.f32 %v379_v39, %v1457_v45  ;;  %v1212_v39 = vld [vmem:[#allocation7 + $0x38] sm:$0xff] }
 0x143   :  { %670 = vmatpush.bf16.msra.mxu0 %v1212_v39 }
 0x144   :  { %v470_v16 = vrot.slane %v421_v6, 7 }
 0x146   :  { %v474_v28 = vsel %vm472_vm8, %v469_v15, %v470_v16 }
 0x147   :  { %v479_v37 = vmul.f32 %v1475_v27, %v474_v28 }
 0x149   :  { %v281_v52 = vpop.f32.mrf.mxu3  ;;  %v422_v62 = vpop.f32.mrf.mxu2 }
 0x14a   :  { %v423_v2 = vadd.f32 %v422_v62, %v281_v52  ;;  %v483_v52 = vadd.f32 %v479_v37, %v378_v42  ;;  %v1211_v42 = vld [vmem:[#allocation7 + $0x30] sm:$0xff] }
 0x14b   :  { %671 = vmatpush.bf16.msra.mxu0 %v1211_v42 }
 0x14c   :  { %v471_v10 = vrot.slane %v423_v2, 7 }
 0x14e   :  { %v476_v21 = vsel %vm472_vm8, %v471_v10, %v468_v14  ;;  %v473_v48 = vsel %vm472_vm8, %v470_v16, %v471_v10 }
 0x14f   :  { %v477_v31 = vmul.f32 %v1466_v19, %v476_v21  ;;  %v484_v55 = vadd.f32 %v473_v48, %v380_v50  ;;  %v1210_v48 = vld [vmem:[#allocation7 + $0x28] sm:$0xff] }
 0x150   :  { %v1202_v50 = vld [vmem:[#allocation7 + $0x68] sm:$0xff]  ;;  %672 = vmatpush.bf16.msra.mxu0 %v1210_v48 }
 0x151   :  { %v458_v56 = vpop.f32.mrf.mxu3  ;;  %v481_v46 = vadd.f32 %v477_v31, %v373_v34 }
 0x152   :  { %v459_v22 = vadd.f32 %v458_v56, %v312_v53 }
 0x154   :  { %v485_v33 = vrot.slane %v459_v22, 1 }
 0x159   :  { %v460_v63 = vpop.f32.mrf.mxu3 }
 0x15a   :  { %v461_v11 = vadd.f32 %v460_v63, %v314_v58 }
 0x15c   :  { %v486_v23 = vrot.slane %v461_v11, 1 }
 0x15e   :  { %v492_v40 = vsel %vm489_vm10, %v485_v33, %v486_v23 }
 0x15f   :  { %v498_v51 = vadd.f32 %v492_v40, %v481_v46  ;;  %v1220_v40 = vld [vmem:[#allocation7 + $0xb8] sm:$0xff]  ;;  %v1219_v46 = vld [vmem:[#allocation7 + $0xb0] sm:$0xff] }
 0x160   :  { %754 = vmatpush.bf16.msra.mxu1 %v1220_v40 }
 0x161   :  { %v463_v12 = vpop.f32.mrf.mxu3 }
 0x162   :  { %v464_v17 = vadd.f32 %v463_v12, %v317_v7 }
 0x164   :  { %v487_v24 = vrot.slane %v464_v17, 1  ;;  %755 = vmatpush.bf16.msra.mxu1 %v1219_v46 }
 0x166   :  { %v491_v29 = vsel %vm489_vm10, %v486_v23, %v487_v24 }
 0x167   :  { %v495_v32 = vmul.f32 %v1468_v20, %v491_v29 }
 0x169   :  { %v465_v38 = vpop.f32.mrf.mxu3  ;;  %v499_v47 = vadd.f32 %v495_v32, %v482_v36 }
 0x16a   :  { %v466_v41 = vadd.f32 %v465_v38, %v319_v35 }
 0x16b   :  { %v502_v57 = vadd.f32 %v499_v47, %v498_v51 }
 0x16c   :  { %v488_v44 = vrot.slane %v466_v41, 1  ;;  %v1204_v41 = vld [vmem:[#allocation7 + $0x78] sm:$0xff] }
 0x16d   :  { %833 = vmatpush.bf16.msra.mxu2 %v1204_v41 }
 0x16e   :  { %v490_v53 = vsel %vm489_vm10, %v487_v24, %v488_v44  ;;  %v493_v54 = vsel %vm489_vm10, %v488_v44, %v485_v33  ;;  %v1218_v44 = vld [vmem:[#allocation7 + $0xa8] sm:$0xff] }
 0x16f   :  { %v497_v43 = vmul.f32 %v1489_v49, %v493_v54  ;;  %v500_v56 = vadd.f32 %v490_v53, %v483_v52  ;;  %756 = vmatpush.bf16.msra.mxu1 %v1218_v44  ;;  %v1217_v52 = vld [vmem:[#allocation7 + $0xa0] sm:$0xff]  ;;  %v1208_v54 = vld [vmem:[#allocation7 + $0x18] sm:$0xff] }
 0x170   :  { %v1201_v53 = vld [vmem:[#allocation7 + $0x60] sm:$0xff] }
 0x171   :  { %v501_v58 = vadd.f32 %v497_v43, %v484_v55  ;;  %v503_v59 = vadd.f32 %v502_v57, %v500_v56  ;;  %v1216_v55 = vld [vmem:[#allocation7 + $0x98] sm:$0xff]  ;;  %v1215_v57 = vld [vmem:[#allocation7 + $0x90] sm:$0xff] }
 0x172   :  { %v1200_v43 = vld [vmem:[#allocation7 + $0x58] sm:$0xff] }
 0x173   :  { %v504_v61 = vadd.f32 %v503_v59, %v501_v58  ;;  %757 = vmatpush.bf16.msra.mxu1 %v1217_v52  ;;  %v1206_v59 = vld [vmem:[#allocation7 + $0x8] sm:$0xff] }
 0x175   :  { %v505_v62 = vrot.slane %v504_v61, 4 }
 0x177   :  { %v506_v63 = vadd.f32 %v505_v62, %v504_v61  ;;  %758 = vmatpush.bf16.msra.mxu1 %v1216_v55  ;;  %v1214_v61 = vld [vmem:[#allocation7 + $0x88] sm:$0xff] }
 0x178   :  { %v1198_v62 = vld [vmem:[#allocation7 + $0x48] sm:$0xff] }
 0x179   :  { %v507_v0 = vrot.slane %v506_v63, 2 }
 0x17b   :  { %v508_v45 = vadd.f32 %v507_v0, %v506_v63  ;;  %759 = vmatpush.bf16.msra.mxu1 %v1215_v57  ;;  %v1205_v63 = vld [vmem:[#allocation7] sm:$0xff] }
 0x17c   :  { %v1213_v0 = vld [vmem:[#allocation7 + $0x80] sm:$0xff] }
 0x17d   :  { %v509_v1 = vrot.slane %v508_v45, 1 }
 0x17f   :  { %v510_v2 = vadd.f32 %v509_v1, %v508_v45  ;;  %760 = vmatpush.bf16.msra.mxu1 %v1214_v61  ;;  %v1197_v1 = vld [vmem:[#allocation7 + $0x40] sm:$0xff] }
 0x181   :  { %511 = vrot.lane.b32.xlu0 %v510_v2, %s1350_s1 }
 0x183   :  { %761 = vmatpush.bf16.msra.mxu1 %v1213_v0 }
 0x1f3   :  { %v512_v3 = vpop.permute.xlu0 %511 }
 0x1f4   :  { %v513_v4 = vadd.f32 %v512_v3, %v510_v2 }
 0x1f6   :  { %514 = vrot.lane.b32.xlu0 %v513_v4, %s1351_s15 }
 0x268   :  { %v515_v5 = vpop.permute.xlu0 %514 }
 0x269   :  { %v516_v6 = vadd.f32 %v515_v5, %v513_v4 }
 0x26b   :  { %517 = vrot.lane.b32.xlu1 %v516_v6, %s1352_s16 }
 0x2dd   :  { %v518_v7 = vpop.permute.xlu1 %517 }
 0x2de   :  { %v519_v8 = vadd.f32 %v518_v7, %v516_v6 }
 0x2e0   :  { %520 = vrot.lane.b32.xlu1 %v519_v8, %s1344_s21 }
 0x352   :  { %v521_v9 = vpop.permute.xlu1 %520 }
 0x353   :  { %v522_v10 = vadd.f32 %v521_v9, %v519_v8 }
 0x355   :  { %v523_v11 = vmul.f32 0.001953125, %v522_v10  ;;  %v555_v10 = vld [vmem:[%s1575_s6] sm:$0x1] }
 0x357   :  { %v524_v12 = vperm.slane %v523_v11, 0 }
 0x359   :  { %v1501_v13 = vsub.f32 %v498_v51, %v524_v12  ;;  %v1503_v14 = vsub.f32 %v499_v47, %v524_v12  ;;  %v1505_v15 = vsub.f32 %v500_v56, %v524_v12  ;;  %v1507_v16 = vsub.f32 %v501_v58, %v524_v12  ;;  %v1203_v47 = vld [vmem:[#allocation7 + $0x70] sm:$0xff]  ;;  %v1209_v51 = vld [vmem:[#allocation7 + $0x20] sm:$0xff] }
 0x35a   :  { %834 = vmatpush.bf16.msra.mxu2 %v1203_v47  ;;  %673 = vmatpush.bf16.msra.mxu0 %v1209_v51  ;;  %v1207_v56 = vld [vmem:[#allocation7 + $0x10] sm:$0xff] }
 0x35b   :  { %v529_v17 = vmul.f32 %v1501_v13, %v1501_v13  ;;  %v530_v18 = vmul.f32 %v1503_v14, %v1503_v14  ;;  %v531_v21 = vmul.f32 %v1505_v15, %v1505_v15  ;;  %v532_v23 = vmul.f32 %v1507_v16, %v1507_v16  ;;  %v1199_v58 = vld [vmem:[#allocation7 + $0x50] sm:$0xff] }
 0x35d   :  { %v533_v22 = vadd.f32 %v530_v18, %v529_v17 }
 0x35e   :  { %835 = vmatpush.bf16.msra.mxu2 %v1202_v50  ;;  %674 = vmatpush.bf16.msra.mxu0 %v1208_v54 }
 0x35f   :  { %v534_v24 = vadd.f32 %v533_v22, %v531_v21  ;;  %v1235_v21 = vld [vmem:[%s1576_s7] ss:$0 sm:$0xff] }
 0x361   :  { %v535_v25 = vadd.f32 %v534_v24, %v532_v23 }
 0x362   :  { %836 = vmatpush.bf16.msra.mxu2 %v1201_v53  ;;  %675 = vmatpush.bf16.msra.mxu0 %v1207_v56 }
 0x363   :  { %v536_v26 = vrot.slane %v535_v25, 4 }
 0x365   :  { %v537_v28 = vadd.f32 %v536_v26, %v535_v25 }
 0x366   :  { %837 = vmatpush.bf16.msra.mxu2 %v1200_v43  ;;  %676 = vmatpush.bf16.msra.mxu0 %v1206_v59 }
 0x367   :  { %v538_v29 = vrot.slane %v537_v28, 2 }
 0x369   :  { %v539_v30 = vadd.f32 %v538_v29, %v537_v28 }
 0x36a   :  { %838 = vmatpush.bf16.msra.mxu2 %v1199_v58  ;;  %677 = vmatpush.bf16.msra.mxu0 %v1205_v63 }
 0x36b   :  { %v540_v31 = vrot.slane %v539_v30, 1 }
 0x36d   :  { %v541_v32 = vadd.f32 %v540_v31, %v539_v30 }
 0x36e   :  { %839 = vmatpush.bf16.msra.mxu2 %v1198_v62 }
 0x36f   :  { %542 = vrot.lane.b32.xlu2 %v541_v32, %s1350_s1 }
 0x372   :  { %840 = vmatpush.bf16.msra.mxu2 %v1197_v1 }
 0x3c9   :  { %v543_v33 = vpop.permute.xlu2 %542 }
 0x3ca   :  { %v544_v34 = vadd.f32 %v543_v33, %v541_v32 }
 0x3cc   :  { %545 = vrot.lane.b32.xlu2 %v544_v34, %s1351_s15 }
 0x426   :  { %v546_v35 = vpop.permute.xlu2 %545 }
 0x427   :  { %v547_v36 = vadd.f32 %v546_v35, %v544_v34 }
 0x429   :  { %548 = vrot.lane.b32.xlu0 %v547_v36, %s1352_s16 }
 0x49b   :  { %v549_v37 = vpop.permute.xlu0 %548 }
 0x49c   :  { %v550_v38 = vadd.f32 %v549_v37, %v547_v36 }
 0x49e   :  { %551 = vrot.lane.b32.xlu1 %v550_v38, %s1344_s21 }
 0x510   :  { %v552_v45 = vpop.permute.xlu1 %551 }
 0x511   :  { %v553_v2 = vadd.f32 %v552_v45, %v550_v38 }
 0x513   :  { %v554_v3 = vmul.f32 0.001953125, %v553_v2 }
 0x515   :  { %v556_v4 = vadd.f32 1e-05, %v554_v3 }
 0x517   :  { %1237 = vrsqrt.f32 %v556_v4  ;;  %vm563_vm13 = vweird.f32 %v556_v4 }
 0x51d   :  { %v1238_v5 = vpop.eup %1237 }
 0x51e   :  { %v558_v6 = vmul.f32 %v1238_v5, %v556_v4  ;;  %vm564_vm12 = vweird.f32 %v1238_v5 }
 0x51f   :  { %vm565_vm14 = vmor %vm563_vm13, %vm564_vm12 }
 0x520   :  { %v559_v7 = vmul.f32 %v1238_v5, %v558_v6 }
 0x522   :  { %v560_v8 = vmul.f32 0.5, %v559_v7 }
 0x524   :  { %v561_v9 = vsub.f32 1.5, %v560_v8 }
 0x526   :  { %v562_v11 = vmul.f32 %v1238_v5, %v561_v9 }
 0x528   :  { %v566_v12 = vsel %vm565_vm14, %v1238_v5, %v562_v11 }
 0x529   :  { %v567_v17 = vmul.f32 %v566_v12, %v555_v10 }
 0x52b   :  { %v569_v18 = vperm.slane %v567_v17, 0 }
 0x52d   :  { %v571_v22 = vmul.f32 %v569_v18, %v1501_v13  ;;  %v572_v23 = vmul.f32 %v569_v18, %v1503_v14  ;;  %v573_v30 = vmul.f32 %v569_v18, %v1505_v15  ;;  %v574_v31 = vmul.f32 %v569_v18, %v1507_v16 }
 0x52f   :  { %v579_v24 = vadd.f32 %v1235_v21, %v571_v22  ;;  %v580_v25 = vadd.f32 %v1235_v21, %v572_v23  ;;  %v581_v32 = vadd.f32 %v1235_v21, %v573_v30  ;;  %v582_v33 = vadd.f32 %v1235_v21, %v574_v31 }
 0x531   :  { %v583_v26 = vmax.f32 %v579_v24, 0.0  ;;  %v584_v28 = vmax.f32 %v580_v25, 0.0  ;;  %v585_v34 = vmax.f32 %v581_v32, 0.0  ;;  %v586_v35 = vmax.f32 %v582_v33, 0.0 }
 0x533   :  { %v587_v29 = vpack.c.bf16 %v584_v28, %v583_v26  ;;  %v588_v36 = vpack.c.bf16 %v586_v35, %v585_v34 }
 0x535   :  { %678 = vmatmul.bf16.vlgmr.msra.gmra.mxu0 %v587_v29  ;;  %762 = vmatmul.bf16.vlgmr.msra.gmra.mxu1 %v587_v29 }
 0x536   :  { %841 = vmatmul.bf16.vlgmr.msra.gmra.mxu2 %v587_v29 }
 0x545   :  { %683 = vmatmul.bf16.gmra.mxu0 %v588_v36  ;;  %767 = vmatmul.bf16.gmra.mxu1 %v588_v36 }
 0x546   :  { %846 = vmatmul.bf16.gmra.mxu2 %v588_v36 }
 0x5b2   :  { %v679_v13 = vpop.f32.mrf.mxu0  ;;  %v763_v14 = vpop.f32.mrf.mxu1 }
 0x5b3   :  { %v773_v51 = vrot.slane %v679_v13, 7  ;;  %v852_v59 = vrot.slane %v763_v14, 1 }
 0x5b9   :  { %v842_v37 = vpop.f32.mrf.mxu2 }
 0x5ba   :  { %v681_v38 = vpop.f32.mrf.mxu0  ;;  %v765_v39 = vpop.f32.mrf.mxu1 }
 0x5bb   :  { %v774_v47 = vrot.slane %v681_v38, 7  ;;  %v853_v16 = vrot.slane %v765_v39, 1 }
 0x5bd   :  { %v779_v61 = vsel %vm472_vm8, %v773_v51, %v774_v47  ;;  %v858_v0 = vsel %vm489_vm10, %v852_v59, %v853_v16 }
 0x5c1   :  { %v844_v40 = vpop.f32.mrf.mxu2 }
 0x5c2   :  { %v684_v41 = vpop.f32.mrf.mxu0  ;;  %v768_v42 = vpop.f32.mrf.mxu1  ;;  %v845_v62 = vadd.f32 %v844_v40, %v779_v61 }
 0x5c3   :  { %v775_v46 = vrot.slane %v684_v41, 7  ;;  %v854_v15 = vrot.slane %v768_v42, 1 }
 0x5c5   :  { %v857_v52 = vsel %vm489_vm10, %v853_v16, %v854_v15  ;;  %v778_v53 = vsel %vm472_vm8, %v774_v47, %v775_v46 }
 0x5c6   :  { %v861_v56 = vmul.f32 %v1468_v20, %v857_v52  ;;  %v783_v57 = vmul.f32 %v1475_v27, %v778_v53 }
 0x5c9   :  { %v847_v48 = vpop.f32.mrf.mxu2 }
 0x5ca   :  { %v686_v44 = vpop.f32.mrf.mxu0  ;;  %v770_v50 = vpop.f32.mrf.mxu1  ;;  %v848_v2 = vadd.f32 %v847_v48, %v783_v57 }
 0x5cb   :  { %v776_v54 = vrot.slane %v686_v44, 7  ;;  %v855_v43 = vrot.slane %v770_v50, 1 }
 0x5cd   :  { %v780_v55 = vsel %vm472_vm8, %v776_v54, %v773_v51  ;;  %v856_v45 = vsel %vm489_vm10, %v854_v15, %v855_v43  ;;  %v859_v1 = vsel %vm489_vm10, %v855_v43, %v852_v59  ;;  %v777_v20 = vsel %vm472_vm8, %v775_v46, %v776_v54 }
 0x5ce   :  { %v781_v58 = vmul.f32 %v1466_v19, %v780_v55  ;;  %v865_v19 = vadd.f32 %v861_v56, %v845_v62  ;;  %v866_v5 = vadd.f32 %v856_v45, %v848_v2  ;;  %v863_v6 = vmul.f32 %v1489_v49, %v859_v1 }
 0x5d0   :  { %v843_v63 = vadd.f32 %v842_v37, %v781_v58 }
 0x5d1   :  { %v849_v27 = vpop.f32.mrf.mxu2 }
 0x5d2   :  { %v864_v3 = vadd.f32 %v858_v0, %v843_v63  ;;  %v850_v4 = vadd.f32 %v849_v27, %v777_v20  ;;  %v921_v63 = vld [vmem:[%s1577_s8] sm:$0x1]  ;;  %s961_s8 = sshll.u32 %s1353_s23, 4  ;;  %s962_s8 = int_to_ptr.vmem [resolvable:$true] %s961_s8 }
 0x5d3   :  { %v1236_v20 = vld [vmem:[%s1578_s9] ss:$0 sm:$0xff]  ;;  %s1354_s9 = smov 128  }
 0x5d4   :  { %v868_v7 = vadd.f32 %v865_v19, %v864_v3  ;;  %v867_v8 = vadd.f32 %v863_v6, %v850_v4 }
 0x5d6   :  { %v869_v9 = vadd.f32 %v868_v7, %v866_v5 }
 0x5d8   :  { %v870_v10 = vadd.f32 %v869_v9, %v867_v8 }
 0x5da   :  { %v871_v11 = vrot.slane %v870_v10, 4 }
 0x5dc   :  { %v872_v12 = vadd.f32 %v871_v11, %v870_v10 }
 0x5de   :  { %v873_v17 = vrot.slane %v872_v12, 2 }
 0x5e0   :  { %v874_v18 = vadd.f32 %v873_v17, %v872_v12 }
 0x5e2   :  { %v875_v21 = vrot.slane %v874_v18, 1 }
 0x5e4   :  { %v876_v22 = vadd.f32 %v875_v21, %v874_v18 }
 0x5e6   :  { %877 = vrot.lane.b32.xlu2 %v876_v22, %s1350_s1 }
 0x640   :  { %v878_v60 = vpop.permute.xlu2 %877 }
 0x641   :  { %v879_v23 = vadd.f32 %v878_v60, %v876_v22 }
 0x643   :  { %880 = vrot.lane.b32.xlu0 %v879_v23, %s1351_s15 }
 0x6b5   :  { %v881_v24 = vpop.permute.xlu0 %880 }
 0x6b6   :  { %v882_v25 = vadd.f32 %v881_v24, %v879_v23 }
 0x6b8   :  { %883 = vrot.lane.b32.xlu1 %v882_v25, %s1352_s16 }
 0x72a   :  { %v884_v49 = vpop.permute.xlu1 %883 }
 0x72b   :  { %v885_v26 = vadd.f32 %v884_v49, %v882_v25 }
 0x72d   :  { %886 = vrot.lane.b32.xlu2 %v885_v26, %s1344_s21 }
 0x787   :  { %v887_v28 = vpop.permute.xlu2 %886 }
 0x788   :  { %v888_v29 = vadd.f32 %v887_v28, %v885_v26 }
 0x78a   :  { %v889_v30 = vmul.f32 0.001953125, %v888_v29 }
 0x78c   :  { %v890_v31 = vperm.slane %v889_v30, 0 }
 0x78e   :  { %v891_v32 = vsub.f32 %v864_v3, %v890_v31  ;;  %v892_v33 = vsub.f32 %v865_v19, %v890_v31  ;;  %v893_v34 = vsub.f32 %v866_v5, %v890_v31  ;;  %v894_v35 = vsub.f32 %v867_v8, %v890_v31 }
 0x790   :  { %v895_v36 = vmul.f32 %v891_v32, %v891_v32  ;;  %v896_v13 = vmul.f32 %v892_v33, %v892_v33  ;;  %v897_v14 = vmul.f32 %v893_v34, %v893_v34  ;;  %v898_v38 = vmul.f32 %v894_v35, %v894_v35 }
 0x792   :  { %v899_v37 = vadd.f32 %v896_v13, %v895_v36 }
 0x794   :  { %v900_v39 = vadd.f32 %v899_v37, %v897_v14 }
 0x796   :  { %v901_v40 = vadd.f32 %v900_v39, %v898_v38 }
 0x798   :  { %v902_v41 = vrot.slane %v901_v40, 4 }
 0x79a   :  { %v903_v42 = vadd.f32 %v902_v41, %v901_v40 }
 0x79c   :  { %v904_v46 = vrot.slane %v903_v42, 2 }
 0x79e   :  { %v905_v15 = vadd.f32 %v904_v46, %v903_v42 }
 0x7a0   :  { %v906_v47 = vrot.slane %v905_v15, 1 }
 0x7a2   :  { %v907_v16 = vadd.f32 %v906_v47, %v905_v15 }
 0x7a4   :  { %908 = vrot.lane.b32.xlu0 %v907_v16, %s1350_s1 }
 0x816   :  { %v909_v48 = vpop.permute.xlu0 %908 }
 0x817   :  { %v910_v44 = vadd.f32 %v909_v48, %v907_v16 }
 0x819   :  { %911 = vrot.lane.b32.xlu1 %v910_v44, %s1351_s15 }
 0x88b   :  { %v912_v50 = vpop.permute.xlu1 %911 }
 0x88c   :  { %v913_v51 = vadd.f32 %v912_v50, %v910_v44 }
 0x88e   :  { %914 = vrot.lane.b32.xlu2 %v913_v51, %s1352_s16 }
 0x8e8   :  { %v915_v52 = vpop.permute.xlu2 %914 }
 0x8e9   :  { %v916_v53 = vadd.f32 %v915_v52, %v913_v51 }
 0x8eb   :  { %917 = vrot.lane.b32.xlu0 %v916_v53, %s1344_s21 }
 0x95d   :  { %v918_v54 = vpop.permute.xlu0 %917 }
 0x95e   :  { %v919_v55 = vadd.f32 %v918_v54, %v916_v53 }
 0x960   :  { %v920_v43 = vmul.f32 0.001953125, %v919_v55 }
 0x962   :  { %v922_v56 = vadd.f32 1e-05, %v920_v43 }
 0x964   :  { %1239 = vrsqrt.f32 %v922_v56  ;;  %vm929_vm0 = vweird.f32 %v922_v56 }
 0x96a   :  { %v1240_v57 = vpop.eup %1239 }
 0x96b   :  { %v924_v58 = vmul.f32 %v1240_v57, %v922_v56  ;;  %vm930_vm15 = vweird.f32 %v1240_v57 }
 0x96c   :  { %vm931_vm1 = vmor %vm929_vm0, %vm930_vm15 }
 0x96d   :  { %v925_v59 = vmul.f32 %v1240_v57, %v924_v58 }
 0x96f   :  { %v926_v61 = vmul.f32 0.5, %v925_v59 }
 0x971   :  { %v927_v62 = vsub.f32 1.5, %v926_v61 }
 0x973   :  { %v928_v0 = vmul.f32 %v1240_v57, %v927_v62 }
 0x975   :  { %v932_v45 = vsel %vm931_vm1, %v1240_v57, %v928_v0 }
 0x976   :  { %v933_v1 = vmul.f32 %v932_v45, %v921_v63 }
 0x978   :  { %v935_v27 = vperm.slane %v933_v1, 0 }
 0x97a   :  { %v937_v19 = vmul.f32 %v935_v27, %v891_v32  ;;  %v938_v2 = vmul.f32 %v935_v27, %v892_v33  ;;  %v939_v3 = vmul.f32 %v935_v27, %v893_v34  ;;  %v940_v4 = vmul.f32 %v935_v27, %v894_v35 }
 0x97c   :  { %v945_v5 = vadd.f32 %v1236_v20, %v937_v19  ;;  %v946_v6 = vadd.f32 %v1236_v20, %v938_v2  ;;  %v947_v7 = vadd.f32 %v1236_v20, %v939_v3  ;;  %v948_v8 = vadd.f32 %v1236_v20, %v940_v4 }
 0x97e   :  { %v949_v9 = vmax.f32 %v945_v5, 0.0  ;;  %v950_v10 = vmax.f32 %v946_v6, 0.0  ;;  %v951_v11 = vmax.f32 %v947_v7, 0.0  ;;  %v952_v12 = vmax.f32 %v948_v8, 0.0 }
 0x980   :  { %953 = vst [vmem:[#allocation8] sm:$0xff] %v949_v9 }
 0x981   :  { %954 = vst [vmem:[#allocation8 + $0x8] sm:$0xff] %v950_v10 }
 0x982   :  { %955 = vst [vmem:[#allocation8 + $0x10] sm:$0xff] %v951_v11 }
 0x983   :  { %956 = vst [vmem:[#allocation8 + $0x18] sm:$0xff] %v952_v12 }
 0x984   :  { %969 = dma.vmem_to_hbm [thread:$0]  %s962_s8, 512, %s964_s26, [#allocation4], %s1354_s9, %s1354_s9, %s1350_s1  }
 0x985   :  { %1341 = dma.done.wait [#allocation4], 512  }
 0x986   :  { %1342 = vsyncadd [#allocation4], 4294966784 }
 0x987   :  { %974 = vsyncpa [#allocation3], 1 }
 0x988   :  { %975 = vsyncpa [#allocation6], 1 }
 0x989   :  { %976 = vsyncpa [#allocation4], 1 }

</bundles_post_ra>
